<compile_context>
chip_gen: v5e
topology: v5e:2x2
jax: 0.10.0
libtpu: 0.0.40
codegen_flags: <defaults>
</compile_context>

<pallas_src>
import jax
import jax.numpy as jnp
from jax.experimental import pallas as pl
from jax.experimental.pallas import tpu as pltpu


# --------------------------------------------------------------------------
# Pallas kernel: one (tm, tn) output tile of  x @ W^T + b
# --------------------------------------------------------------------------
def _linear_bias_kernel(x_ref, wt_ref, b_ref, o_ref):
    # x_ref: (tm, K), wt_ref: (K, tn), b_ref: (1, tn), o_ref: (tm, tn)
    acc = jnp.dot(x_ref[...], wt_ref[...], preferred_element_type=jnp.float32)
    o_ref[...] = (acc + b_ref[...].astype(jnp.float32)).astype(o_ref.dtype)


def _pick_tiles(M, N, K, dtype_bytes, budget_bytes=20 * 1024 * 1024):
    """Pick (tm, tn) tiles: as large as possible (<=512) under a VMEM budget.

    Budget accounts for double-buffered x/W/out blocks + the resident bias
    block, staying well inside v7x's 32 MiB scoped-VMEM default.
    """
    tm = M if M <= 512 else 512          # 512 is a multiple of 8 (sublane)
    tn = N if N <= 512 else 512          # 512 is a multiple of 128 (lane)

    def est(tm_, tn_):
        return dtype_bytes * (2 * tm_ * K + 2 * K * tn_ + 2 * tm_ * tn_ + tn_)

    while est(tm, tn) > budget_bytes and (tm > 8 or tn > 128):
        if tm >= tn and tm > 8:
            tm = max(8, (tm // 2 // 8) * 8)
        elif tn > 128:
            tn = max(128, (tn // 2 // 128) * 128)
        else:
            break
    return tm, tn


def linear_pallas(x, weight, bias):
    """logits = x @ weight.T + bias   (weight: (N, K), bias: (N,), torch layout)."""
    orig_shape = x.shape
    K = orig_shape[-1]
    N = weight.shape[0]
    x2 = x.reshape(-1, K)
    M = x2.shape[0]

    wt = weight.T.astype(x.dtype)                 # (K, N): tiny one-time transpose
    b2 = bias.reshape(1, N).astype(x.dtype)       # (1, N): resident, broadcast over rows

    tm, tn = _pick_tiles(M, N, K, jnp.dtype(x.dtype).itemsize)
    grid = (pl.cdiv(M, tm), pl.cdiv(N, tn))       # ragged last blocks are masked by Pallas

    out = pl.pallas_call(
        _linear_bias_kernel,
        out_shape=jax.ShapeDtypeStruct((M, N), x.dtype),
        grid_spec=pltpu.PrefetchScalarGridSpec(
            num_scalar_prefetch=0,
            grid=grid,
            in_specs=[
                pl.BlockSpec((tm, K), lambda i, j: (i, 0)),   # activations row-tile
                pl.BlockSpec((K, tn), lambda i, j: (0, j)),   # weight col-tile
                pl.BlockSpec((1, tn), lambda i, j: (0, j)),   # bias (stays resident)
            ],
            out_specs=pl.BlockSpec((tm, tn), lambda i, j: (i, j)),
        ),
        compiler_params=pltpu.CompilerParams(
            # Both axes independent -> shard across v7x's two TensorCores.
            dimension_semantics=("parallel", "parallel"),
        ),
    )(x2, wt, b2)

    return out.reshape(orig_shape[:-1] + (N,))


# --------------------------------------------------------------------------
# FixedBernoulli distribution (elementwise math over logits; plain jnp)
# --------------------------------------------------------------------------
class FixedBernoulli:
    def __init__(self, logits):
        self.logits = logits
        self.probs = jax.nn.sigmoid(logits)

    def log_probs(self, actions):
        lp = (actions * jax.nn.log_sigmoid(self.logits)
              + (1.0 - actions) * jax.nn.log_sigmoid(-self.logits))
        return lp.reshape(actions.shape[0], -1).sum(-1)[:, None]

    def entropy(self):
        ent = -(self.probs * jax.nn.log_sigmoid(self.logits)
                + (1.0 - self.probs) * jax.nn.log_sigmoid(-self.logits))
        return ent.sum(-1)

    def mode(self):
        return (self.probs > 0.5).astype(jnp.float32)

    # TODO(synk): .sample() (random Bernoulli draws) not implemented here.


# --------------------------------------------------------------------------
# Bernoulli module equivalent
# --------------------------------------------------------------------------
class Bernoulli:
    def __init__(self, num_inputs, num_outputs, key, use_orthogonal=True, gain=0.01):
        if use_orthogonal:
            w_init = jax.nn.initializers.orthogonal(scale=gain)
            self.weight = w_init(key, (num_outputs, num_inputs), jnp.float32)
        else:
            w_init = jax.nn.initializers.glorot_uniform()
            self.weight = gain * w_init(key, (num_outputs, num_inputs), jnp.float32)
        self.bias = jnp.zeros((num_outputs,), jnp.float32)   # constant-0 init, like the module

    def __call__(self, x, available_actions=None):
        logits = linear_pallas(x, self.weight, self.bias)
        return FixedBernoulli(logits=logits)


# --------------------------------------------------------------------------
# Self-test
# --------------------------------------------------------------------------
if __name__ == "__main__":
    key = jax.random.PRNGKey(0)
    k_w, k_x, k_a, k_w2, k_b2, k_x2 = jax.random.split(key, 6)

    # ----- module-faithful small case: batch=8, num_inputs=32, num_outputs=4 -----
    num_inputs, num_outputs, batch = 32, 4, 8
    head = Bernoulli(num_inputs, num_outputs, k_w, use_orthogonal=True, gain=0.01)
    x = jax.random.normal(k_x, (batch, num_inputs), dtype=jnp.float32)

    dist = head(x)
    logits = jax.block_until_ready(dist.logits)

    ref_logits = x @ head.weight.T + head.bias[None, :]
    assert logits.shape == (batch, num_outputs) and logits.dtype == jnp.float32
    assert jnp.allclose(logits, ref_logits, atol=5e-3, rtol=1e-2)

    ref_probs = jax.nn.sigmoid(ref_logits)
    assert jnp.allclose(dist.mode(), (ref_probs > 0.5).astype(jnp.float32))
    assert dist.entropy().shape == (batch,)
    actions = (jax.random.uniform(k_a, (batch, num_outputs)) > 0.5).astype(jnp.float32)
    assert dist.log_probs(actions).shape == (batch, 1)

    # ----- larger / ragged-tile case with a nonzero bias (exercises grid masking) -----
    M2, K2, N2 = 1000, 96, 12          # M2 > 512 -> 2 row tiles, second one ragged
    W2 = 0.01 * jax.random.normal(k_w2, (N2, K2), dtype=jnp.float32)
    b2 = jax.random.normal(k_b2, (N2,), dtype=jnp.float32)
    x2 = jax.random.normal(k_x2, (M2, K2), dtype=jnp.float32)

    out2 = jax.block_until_ready(linear_pallas(x2, W2, b2))
    ref2 = x2 @ W2.T + b2[None, :]
    assert out2.shape == ref2.shape and out2.dtype == ref2.dtype
    assert jnp.allclose(out2, ref2, atol=5e-3, rtol=1e-2)

    print("KERNEL_OK")
</pallas_src>

<mosaic_0001>
module attributes {stable_mosaic.version = 11 : i64} {
  func.func @_linear_bias_kernel(%arg0: i32, %arg1: i32, %arg2: memref<8x32xf32, #tpu.memory_space<vmem>>, %arg3: memref<32x4xf32, #tpu.memory_space<vmem>>, %arg4: memref<1x4xf32, #tpu.memory_space<vmem>>, %arg5: memref<8x4xf32, #tpu.memory_space<vmem>>) attributes {dimension_semantics = [#tpu.dimension_semantics<parallel>, #tpu.dimension_semantics<parallel>], iteration_bounds = array<i64: 1, 1>, scalar_prefetch = 0 : i64, scratch_operands = 0 : i64, tpu.core_type = #tpu.core_type<tc>, window_params = [{transform_indices = @transform_0, window_bounds = array<i64: 8, 32>}, {transform_indices = @transform_1, window_bounds = array<i64: 32, 4>}, {transform_indices = @transform_2, window_bounds = array<i64: 1, 4>}, {transform_indices = @transform_3, window_bounds = array<i64: 8, 4>}]} {
    %c0 = arith.constant 0 : index
    %c0_0 = arith.constant 0 : index
    %0 = vector.load %arg2[%c0, %c0_0] : memref<8x32xf32, #tpu.memory_space<vmem>>, vector<8x32xf32>
    %c0_1 = arith.constant 0 : index
    %c0_2 = arith.constant 0 : index
    %1 = vector.load %arg3[%c0_1, %c0_2] : memref<32x4xf32, #tpu.memory_space<vmem>>, vector<32x4xf32>
    %cst = arith.constant dense<0.000000e+00> : vector<8x4xf32>
    %2 = tpu.matmul %0, %1, %cst {dimension_numbers = #tpu.dot_dimension_numbers<[1], [0], [0], [1], [0, 0, 1, 1], [], []>} : vector<8x32xf32>, vector<32x4xf32>, vector<8x4xf32> -> vector<8x4xf32>
    %c0_3 = arith.constant 0 : index
    %c0_4 = arith.constant 0 : index
    %3 = vector.load %arg4[%c0_3, %c0_4] : memref<1x4xf32, #tpu.memory_space<vmem>>, vector<1x4xf32>
    %4 = vector.broadcast %3 : vector<1x4xf32> to vector<8x4xf32>
    %5 = arith.addf %2, %4 : vector<8x4xf32>
    %c0_5 = arith.constant 0 : index
    %c0_6 = arith.constant 0 : index
    %6 = vector.load %arg5[%c0_5, %c0_6] : memref<8x4xf32, #tpu.memory_space<vmem>>, vector<8x4xf32>
    tpu.vector_store %arg5[%c0_5, %c0_6], %5 {strides = array<i32>} : memref<8x4xf32, #tpu.memory_space<vmem>>, vector<8x4xf32>,
    return
  }
  func.func @transform_0(%arg0: i32, %arg1: i32) -> (i32, i32) {
    %c0_i32 = arith.constant 0 : i32
    %c0_i32_0 = arith.constant 0 : i32
    return %arg0, %c0_i32 : i32, i32
  }
  func.func @transform_1(%arg0: i32, %arg1: i32) -> (i32, i32) {
    %c0_i32 = arith.constant 0 : i32
    %c0_i32_0 = arith.constant 0 : i32
    return %c0_i32, %arg1 : i32, i32
  }
  func.func @transform_2(%arg0: i32, %arg1: i32) -> (i32, i32) {
    %c0_i32 = arith.constant 0 : i32
    %c0_i32_0 = arith.constant 0 : i32
    return %c0_i32, %arg1 : i32, i32
  }
  func.func @transform_3(%arg0: i32, %arg1: i32) -> (i32, i32) {
    %c0_i32 = arith.constant 0 : i32
    return %arg0, %arg1 : i32, i32
  }
}

</mosaic_0001>

<bundles_post_ra>
// kernel: tpu_custom_call.1
= control target key start
LH: loop header
LB: loop body
LE: loop exit
PB: predicated region body
PF: predicated region fallthrough
CT: control target
= control target key end

     0   :  { %vm23_vm0 = vcmask 261120   ;;  %vm47_vm1 = vcmask 31744   ;;  %s96_s1 = inlined_call_operand.vmem [shape: f32[32,4], index: 1, kind: input, shape index: {}]   ;;  %s97_s2 = inlined_call_operand.vmem [shape: f32[1,4], index: 2, kind: input, shape index: {}]   ;;  %s98_s0 = inlined_call_operand.vmem [shape: f32[8,32], index: 0, kind: input, shape index: {}]   ;;  %s99_s3 = inlined_call_operand.vmem [shape: f32[8,4], index: 3, kind: output, shape index: {}]  }
   0x1   :  { %v18_v0 = vld [vmem:[%s96_s1 + $0x18] sm:$0xff]  ;;  %v17_v1 = vld [vmem:[%s96_s1 + $0x10] sm:$0xff]  ;;  %v16_v2 = vld [vmem:[%s96_s1 + $0x8] sm:$0xff] }
   0x2   :  { %39 = vmatpush.msra.mxu0 %v18_v0  ;;  %v15_v3 = vld [vmem:[%s96_s1] sm:$0xff] }
   0x3   :  { %v14_v4 = vld [vmem:[%s98_s0] sm:$0xff] }
   0x4   :  { %40 = vmatpush.msra.mxu0 %v17_v1  ;;  %v54_v5 = vld [vmem:[%s97_s2] ss:$0 sm:$0xff] }
   0x6   :  { %41 = vmatpush.msra.mxu0 %v16_v2 }
   0x8   :  { %42 = vmatpush.msra.mxu0 %v15_v3 }
   0x9   :  { %53 = vmatmul.msk.f32.vlgmr.msra.gmra.mxu0 %vm23_vm0, %v14_v4 }
  0x86   :  { %v44_v6 = vpop.f32.mrf.mxu0 }
  0x87   :  { %v45_v7 = vadd.f32 %v54_v5, %v44_v6 }
  0x89   :  { %48 = vst.msk [vmem:[%s99_s3] sm:$0xff] %vm47_vm1, %v45_v7 }

</bundles_post_ra>
